<compile_context>
chip_gen: v6e
topology: v6e:2x2x1
jax: 0.10.0
libtpu: 0.0.40
codegen_flags: <defaults>
</compile_context>

<pallas_src>
import jax
import jax.numpy as jnp
from jax.experimental import pallas as pl
from jax.experimental.pallas import tpu as pltpu


def _round_up(n, m):
    return (n + m - 1) // m * m


def combine_mlp_kernel(x_ref, w1_ref, b1_ref, w2_ref, b2_ref, o_ref):
    """Fused MLP on one batch tile: sigmoid(relu(x @ W1 + b1) @ W2 + b2)."""
    w1 = w1_ref[...]                                       # (36, 256)
    w2 = w2_ref[...]                                       # (256, 128)
    x = x_ref[...]                                         # (tb, 36)

    # First linear (MXU, f32 accumulation) + bias + ReLU (VPU).
    h = jnp.dot(x, w1, preferred_element_type=jnp.float32)
    h = jnp.maximum(h + b1_ref[...], 0.0)                  # broadcast (1, 256)

    # Second linear (lane-dense N=128 on the MXU) + bias + sigmoid (EUP).
    z = jnp.dot(h.astype(w2.dtype), w2, preferred_element_type=jnp.float32)
    z = z + b2_ref[...]                                    # broadcast (1, 128)

    # Store only the real 18 output features (masked vst; no padded HBM write).
    out_f = o_ref.shape[-1]
    o_ref[...] = jax.nn.sigmoid(z[:, :out_f]).astype(o_ref.dtype)


def prepare_params(w1, b1, w2, b2, *, use_bf16=False):
    """One-time lane-dense zero-padding of weights/biases (hoisted out of forward).

    w1: [36, 252], b1: [1, 252] (or [252]), w2: [252, 18], b2: [1, 18] (or [18]).
    Zero padding keeps the math identical; padded output lanes are never stored.
    """
    in_f, hidden = w1.shape
    out_f = w2.shape[1]
    hidden_p = _round_up(hidden, 128)                      # 252 -> 256
    out_p = _round_up(out_f, 128)                          # 18  -> 128
    w_dtype = jnp.bfloat16 if use_bf16 else jnp.float32

    w1p = jnp.zeros((in_f, hidden_p), w_dtype).at[:, :hidden].set(w1.astype(w_dtype))
    b1p = jnp.zeros((1, hidden_p), jnp.float32).at[:, :hidden].set(
        b1.reshape(1, -1).astype(jnp.float32))
    w2p = jnp.zeros((hidden_p, out_p), w_dtype).at[:hidden, :out_f].set(w2.astype(w_dtype))
    b2p = jnp.zeros((1, out_p), jnp.float32).at[:, :out_f].set(
        b2.reshape(1, -1).astype(jnp.float32))
    return (w1p, b1p, w2p, b2p), out_f


def combine_forward(x, padded_params, out_features, *, block_batch=4096, use_bf16=False):
    """Fused Pallas forward, tiled over the batch dimension.

    x: [batch, 36]; returns [batch, out_features] float32 (sigmoid outputs).
    """
    w1p, b1p, w2p, b2p = padded_params
    batch, in_f = x.shape
    hidden_p = w1p.shape[1]
    out_p = w2p.shape[1]

    if use_bf16:
        # Cast at the HBM boundary so the kernel streams half the input bytes.
        x = x.astype(jnp.bfloat16)

    # Batch tiling: full-array block for small batches (no (8,128) constraint),
    # otherwise an 8-aligned tile; partial last block is masked by Pallas.
    if batch <= block_batch:
        tb = batch
    else:
        tb = _round_up(block_batch, 8)
    grid = (pl.cdiv(batch, tb),)

    flops = 2 * batch * (in_f * hidden_p + hidden_p * out_p)
    bytes_accessed = (
        x.size * x.dtype.itemsize
        + batch * out_features * 4
        + w1p.size * w1p.dtype.itemsize + w2p.size * w2p.dtype.itemsize
        + b1p.size * 4 + b2p.size * 4)

    out = pl.pallas_call(
        combine_mlp_kernel,
        out_shape=jax.ShapeDtypeStruct((batch, out_features), jnp.float32),
        grid=grid,
        in_specs=[
            pl.BlockSpec((tb, in_f), lambda i: (i, 0)),         # x tile, pipelined
            pl.BlockSpec((in_f, hidden_p), lambda i: (0, 0)),   # W1 resident
            pl.BlockSpec((1, hidden_p), lambda i: (0, 0)),      # b1 resident
            pl.BlockSpec((hidden_p, out_p), lambda i: (0, 0)),  # W2 resident
            pl.BlockSpec((1, out_p), lambda i: (0, 0)),         # b2 resident
        ],
        # Unpadded output block: last dim (18) equals the full array dim.
        out_specs=pl.BlockSpec((tb, out_features), lambda i: (i, 0)),
        compiler_params=pltpu.CompilerParams(
            dimension_semantics=("parallel",),          # megacore split on v7x
            vmem_limit_bytes=40 * 1024 * 1024,          # ~10 MiB needed at tb=4096
        ),
        cost_estimate=pl.CostEstimate(
            flops=int(flops),
            transcendentals=int(batch * out_p),
            bytes_accessed=int(bytes_accessed),
        ),
    )(x, w1p, b1p, w2p, b2p)
    return out


def combine_reference(x, w1, b1, w2, b2):
    """Pure-JAX reference (forced f32 matmuls) for correctness checking."""
    h = jnp.maximum(
        jnp.dot(x, w1, precision=jax.lax.Precision.HIGHEST) + b1.reshape(1, -1), 0.0)
    z = jnp.dot(h, w2, precision=jax.lax.Precision.HIGHEST) + b2.reshape(1, -1)
    return jax.nn.sigmoid(z)


def init_params(key, in_features=36, hidden=252, out_features=18, dtype=jnp.float32):
    """PyTorch-default Linear init: uniform in [-1/sqrt(fan_in), 1/sqrt(fan_in)]."""
    k1, k2, k3, k4 = jax.random.split(key, 4)
    bound1 = 1.0 / jnp.sqrt(jnp.array(in_features, dtype))
    bound2 = 1.0 / jnp.sqrt(jnp.array(hidden, dtype))
    w1 = jax.random.uniform(k1, (in_features, hidden), dtype, -bound1, bound1)
    b1 = jax.random.uniform(k2, (1, hidden), dtype, -bound1, bound1)
    w2 = jax.random.uniform(k3, (hidden, out_features), dtype, -bound2, bound2)
    b2 = jax.random.uniform(k4, (1, out_features), dtype, -bound2, bound2)
    return w1, b1, w2, b2


if __name__ == "__main__":
    key = jax.random.PRNGKey(0)
    kx, kx2, kp = jax.random.split(key, 3)

    w1, b1, w2, b2 = init_params(kp)
    padded, out_f = prepare_params(w1, b1, w2, b2)   # done once, not per call

    # Small batch: single full-dim block.
    batch = 8
    x = jax.random.normal(kx, (batch, 36), jnp.float32)
    out = jax.block_until_ready(combine_forward(x, padded, out_f))
    ref = combine_reference(x, w1, b1, w2, b2)
    assert out.shape == (batch, 18), out.shape
    assert bool(jnp.all(out >= 0.0)) and bool(jnp.all(out <= 1.0))
    assert bool(jnp.allclose(out, ref, atol=1e-4, rtol=1e-4))

    # Non-divisible batch with a small tile: exercises the multi-step grid and
    # the masked partial last block (no host-side padding of x, unpadded output).
    batch2 = 200
    x2 = jax.random.normal(kx2, (batch2, 36), jnp.float32)
    out2 = jax.block_until_ready(combine_forward(x2, padded, out_f, block_batch=64))
    ref2 = combine_reference(x2, w1, b1, w2, b2)
    assert out2.shape == (batch2, 18), out2.shape
    assert bool(jnp.allclose(out2, ref2, atol=1e-4, rtol=1e-4))

    print("KERNEL_OK")
</pallas_src>

<mosaic_0001>
module attributes {stable_mosaic.version = 11 : i64} {
  func.func @combine_mlp_kernel(%arg0: i32, %arg1: memref<8x36xf32, #tpu.memory_space<vmem>>, %arg2: memref<36x256xf32, #tpu.memory_space<vmem>>, %arg3: memref<1x256xf32, #tpu.memory_space<vmem>>, %arg4: memref<256x128xf32, #tpu.memory_space<vmem>>, %arg5: memref<1x128xf32, #tpu.memory_space<vmem>>, %arg6: memref<8x18xf32, #tpu.memory_space<vmem>>) attributes {dimension_semantics = [#tpu.dimension_semantics<parallel>], iteration_bounds = array<i64: 1>, scalar_prefetch = 0 : i64, scratch_operands = 0 : i64, tpu.core_type = #tpu.core_type<tc>, window_params = [{transform_indices = @transform_0, window_bounds = array<i64: 8, 36>}, {pipeline_mode = #tpu.pipeline_mode<synchronous>, transform_indices = @transform_1, window_bounds = array<i64: 36, 256>}, {pipeline_mode = #tpu.pipeline_mode<synchronous>, transform_indices = @transform_2, window_bounds = array<i64: 1, 256>}, {pipeline_mode = #tpu.pipeline_mode<synchronous>, transform_indices = @transform_3, window_bounds = array<i64: 256, 128>}, {pipeline_mode = #tpu.pipeline_mode<synchronous>, transform_indices = @transform_4, window_bounds = array<i64: 1, 128>}, {transform_indices = @transform_5, window_bounds = array<i64: 8, 18>}]} {
    %c0 = arith.constant 0 : index
    %c0_0 = arith.constant 0 : index
    %0 = vector.load %arg2[%c0, %c0_0] : memref<36x256xf32, #tpu.memory_space<vmem>>, vector<36x256xf32>
    %c0_1 = arith.constant 0 : index
    %c0_2 = arith.constant 0 : index
    %1 = vector.load %arg4[%c0_1, %c0_2] : memref<256x128xf32, #tpu.memory_space<vmem>>, vector<256x128xf32>
    %c0_3 = arith.constant 0 : index
    %c0_4 = arith.constant 0 : index
    %2 = vector.load %arg1[%c0_3, %c0_4] : memref<8x36xf32, #tpu.memory_space<vmem>>, vector<8x36xf32>
    %cst = arith.constant dense<0.000000e+00> : vector<8x256xf32>
    %3 = tpu.matmul %2, %0, %cst {dimension_numbers = #tpu.dot_dimension_numbers<[1], [0], [0], [1], [0, 0, 1, 1], [], []>} : vector<8x36xf32>, vector<36x256xf32>, vector<8x256xf32> -> vector<8x256xf32>
    %c0_5 = arith.constant 0 : index
    %c0_6 = arith.constant 0 : index
    %4 = vector.load %arg3[%c0_5, %c0_6] : memref<1x256xf32, #tpu.memory_space<vmem>>, vector<1x256xf32>
    %5 = vector.broadcast %4 : vector<1x256xf32> to vector<8x256xf32>
    %6 = arith.addf %3, %5 : vector<8x256xf32>
    %cst_7 = arith.constant 0.000000e+00 : f32
    %7 = vector.broadcast %cst_7 : f32 to vector<8x256xf32>
    %8 = arith.maximumf %6, %7 : vector<8x256xf32>
    %cst_8 = arith.constant dense<0.000000e+00> : vector<8x128xf32>
    %9 = tpu.matmul %8, %1, %cst_8 {dimension_numbers = #tpu.dot_dimension_numbers<[1], [0], [0], [1], [0, 0, 1, 1], [], []>} : vector<8x256xf32>, vector<256x128xf32>, vector<8x128xf32> -> vector<8x128xf32>
    %c0_9 = arith.constant 0 : index
    %c0_10 = arith.constant 0 : index
    %10 = vector.load %arg5[%c0_9, %c0_10] : memref<1x128xf32, #tpu.memory_space<vmem>>, vector<1x128xf32>
    %11 = vector.broadcast %10 : vector<1x128xf32> to vector<8x128xf32>
    %12 = arith.addf %9, %11 : vector<8x128xf32>
    %13 = vector.extract_strided_slice %12 {offsets = [0, 0], sizes = [8, 18], strides = [1, 1]} : vector<8x128xf32> to vector<8x18xf32>
    %14 = arith.negf %13 : vector<8x18xf32>
    %15 = math.exp %14 : vector<8x18xf32>
    %cst_11 = arith.constant 1.000000e+00 : f32
    %16 = vector.broadcast %cst_11 : f32 to vector<8x18xf32>
    %17 = arith.addf %16, %15 : vector<8x18xf32>
    %18 = arith.divf %16, %17 : vector<8x18xf32>
    %c0_12 = arith.constant 0 : index
    %c0_13 = arith.constant 0 : index
    %19 = vector.load %arg6[%c0_12, %c0_13] : memref<8x18xf32, #tpu.memory_space<vmem>>, vector<8x18xf32>
    tpu.vector_store %arg6[%c0_12, %c0_13], %18 {strides = array<i32>} : memref<8x18xf32, #tpu.memory_space<vmem>>, vector<8x18xf32>,
    return
  }
  func.func @transform_0(%arg0: i32) -> (i32, i32) {
    %c0_i32 = arith.constant 0 : i32
    %c0_i32_0 = arith.constant 0 : i32
    return %arg0, %c0_i32 : i32, i32
  }
  func.func @transform_1(%arg0: i32) -> (i32, i32) {
    %c0_i32 = arith.constant 0 : i32
    %c0_i32_0 = arith.constant 0 : i32
    %c0_i32_1 = arith.constant 0 : i32
    return %c0_i32, %c0_i32_0 : i32, i32
  }
  func.func @transform_2(%arg0: i32) -> (i32, i32) {
    %c0_i32 = arith.constant 0 : i32
    %c0_i32_0 = arith.constant 0 : i32
    %c0_i32_1 = arith.constant 0 : i32
    return %c0_i32, %c0_i32_0 : i32, i32
  }
  func.func @transform_3(%arg0: i32) -> (i32, i32) {
    %c0_i32 = arith.constant 0 : i32
    %c0_i32_0 = arith.constant 0 : i32
    %c0_i32_1 = arith.constant 0 : i32
    return %c0_i32, %c0_i32_0 : i32, i32
  }
  func.func @transform_4(%arg0: i32) -> (i32, i32) {
    %c0_i32 = arith.constant 0 : i32
    %c0_i32_0 = arith.constant 0 : i32
    %c0_i32_1 = arith.constant 0 : i32
    return %c0_i32, %c0_i32_0 : i32, i32
  }
  func.func @transform_5(%arg0: i32) -> (i32, i32) {
    %c0_i32 = arith.constant 0 : i32
    %c0_i32_0 = arith.constant 0 : i32
    return %arg0, %c0_i32 : i32, i32
  }
}

</mosaic_0001>

<bundles_post_ra>
// kernel: tpu_custom_call.1
= control target key start
LH: loop header
LB: loop body
LE: loop exit
PB: predicated region body
PF: predicated region fallthrough
CT: control target
= control target key end

     0   :  { %10 = vsyncpa [#allocation3], 0  ;;  %s496_s0 = inlined_call_operand.hbm [shape: f32[8,36], index: 0, kind: input, shape index: {}]   ;;  %s497_s1 = inlined_call_operand.hbm [shape: f32[36,256], index: 1, kind: input, shape index: {}]   ;;  %s498_s2 = inlined_call_operand.vmem [shape: f32[1,256], index: 2, kind: input, shape index: {}]   ;;  %s499_s3 = inlined_call_operand.hbm [shape: f32[256,128], index: 3, kind: input, shape index: {}]   ;;  %s500_s4 = inlined_call_operand.vmem [shape: f32[1,128], index: 4, kind: input, shape index: {}]   ;;  %s501_s5 = inlined_call_operand.hbm [shape: f32[8,18], index: 5, kind: output, shape index: {}]  }
   0x1   :  { %11 = vsyncpa [#allocation6], 0 }
   0x2   :  { %12 = vsyncpa [#allocation4], 0  ;;  %s439_s18 = smov [#allocation5]  }
   0x3   :  { %s28_s19 = sshll.u32 %s439_s18, 4  ;;  %s29_s19 = int_to_ptr.vmem [resolvable:$true] %s28_s19 }
   0x4   :  { %s361_s20 = scalar_lea.vmem %s29_s19, 1280  ;;  %p366_p1 = scmp.lt.s32.totalorder %s29_s19, %s29_s19 }
   0x5   :  { %p362_p0 = scmp.ne.s32.totalorder %s29_s19, %s361_s20  ;;  %p367_p2 = scmp.lt.s32.totalorder %s361_s20, %s361_s20 }
   0x7   :  { %p368_p3 = por %p367_p2, %p366_p1 }
   0x9   :  { %p369_p4 = pnand %p368_p3, %p362_p0 }
   0xb   :  { %372 = shalt.err (!%p369_p4)
}
   0xc   :  { %s440_s21 = smov 256   ;;  %s441_s22 = smov 16  }
   0xd   :  { %34 = dma.hbm_to_vmem [thread:$0]  %s497_s1, 1280, %s29_s19, [#allocation6], %s440_s21, %s440_s21, %s441_s22  }
   0xe   :  { %s442_s25 = smov [#allocation2]   ;;  %s443_s27 = smov [#allocation7]  }
   0xf   :  { %s19_s26 = sshll.u32 %s442_s25, 4  ;;  %s42_s28 = sshll.u32 %s443_s27, 4  ;;  %s20_s26 = int_to_ptr.vmem [resolvable:$true] %s19_s26  ;;  %s43_s28 = int_to_ptr.vmem [resolvable:$true] %s42_s28 }
  0x10   :  { %s381_s29 = scalar_lea.vmem %s20_s26, 128  ;;  %p386_p6 = scmp.lt.s32.totalorder %s20_s26, %s20_s26 }
  0x11   :  { %p382_p5 = scmp.ne.s32.totalorder %s20_s26, %s381_s29  ;;  %p387_p7 = scmp.lt.s32.totalorder %s381_s29, %s381_s29 }
  0x13   :  { %p388_p8 = por %p387_p7, %p386_p6 }
  0x15   :  { %p389_p9 = pnand %p388_p8, %p382_p5 }
  0x17   :  { %392 = shalt.err (!%p389_p9)
}
  0x18   :  { %22 = dma.hbm_to_vmem [thread:$0]  %s496_s0, 128, %s20_s26, [#allocation3]  }
  0x19   :  { %s401_s7 = scalar_lea.vmem %s43_s28, 4096  ;;  %p406_p11 = scmp.lt.s32.totalorder %s43_s28, %s43_s28 }
  0x1a   :  { %p402_p10 = scmp.ne.s32.totalorder %s43_s28, %s401_s7  ;;  %p407_p12 = scmp.lt.s32.totalorder %s401_s7, %s401_s7 }
  0x1c   :  { %p408_p13 = por %p407_p12, %p406_p11 }
  0x1e   :  { %p409_p0 = pnand %p408_p13, %p402_p10 }
  0x20   :  { %412 = shalt.err (!%p409_p0)
}
  0x21   :  { %s444_s1 = smov 128   ;;  %s445_s8 = smov 8  }
  0x22   :  { %48 = dma.hbm_to_vmem [thread:$0]  %s499_s3, 4096, %s43_s28, [#allocation6], %s444_s1, %s444_s1, %s445_s8  }
  0x23   :  { %433 = dma.done.wait [#allocation3], 128  }
  0x24   :  { %434 = vsyncadd [#allocation3], 4294967168 }
  0x25   :  { %435 = dma.done.wait [#allocation6], 5376  }
  0x26   :  { %436 = vsyncadd [#allocation6], 4294961920  ;;  %v446_v0 = vmov 0.0   ;;  %vm119_vm0 = vcmask 1043456   ;;  %v69_v1 = vld [vmem:[#allocation5 + $0x48] sm:$0xf]  ;;  %v105_v44 = vlaneseq }
  0x27   :  { %190 = vmatprep.mubr.f32.mxu0 %v446_v0  ;;  %v68_v2 = vld [vmem:[#allocation5 + $0x40] sm:$0xf]  ;;  %v67_v3 = vld [vmem:[#allocation5 + $0x38] sm:$0xff]  ;;  %300 = vmatprep.subr.msk.mxu0 %vm119_vm0, %v69_v1  ;;  %v66_v4 = vld [vmem:[#allocation5 + $0x30] sm:$0xff]  ;;  %vm115_vm1 = vcmask 293888   ;;  %vm282_vm2 = vcmask 146432  }
  0x28   :  { %301 = vmatpush1.msk.msra.mxu0 %vm119_vm0, %v68_v2  ;;  %v65_v5 = vld [vmem:[#allocation5 + $0x28] sm:$0xff]  ;;  %v64_v6 = vld [vmem:[#allocation5 + $0x20] sm:$0xff]  ;;  %v63_v7 = vld [vmem:[#allocation5 + $0x18] sm:$0xff]  ;;  %v106_v45 = vshrl.u32 %v105_v44, 7 }
  0x29   :  { %150 = vmatprep.subr.mxu0 %v67_v3  ;;  %v101_v8 = vld [vmem:[#allocation7 + $0xf8] sm:$0xff]  ;;  %v100_v10 = vld [vmem:[#allocation7 + $0xf0] sm:$0xff]  ;;  %v62_v12 = vld [vmem:[#allocation5 + $0x10] sm:$0xff] }
  0x2a   :  { %151 = vmatpush1.msra.mxu0 %v66_v4  ;;  %305 = vmatprep.subr.mxu1 %v101_v8  ;;  %v85_v9 = vld [vmem:[#allocation7 + $0x78] sm:$0xff]  ;;  %v84_v11 = vld [vmem:[#allocation7 + $0x70] sm:$0xff]  ;;  %v99_v13 = vld [vmem:[#allocation7 + $0xe8] sm:$0xff]  ;;  %v107_v46 = vsub.s32 0, %v106_v45  ;;  %v111_v48 = vsub.s32 1, %v106_v45 }
  0x2b   :  { %152 = vmatprep.subr.mxu0 %v65_v5  ;;  %306 = vmatpush3.msra.mxu1 %v85_v9  ;;  %v61_v14 = vld [vmem:[#allocation5 + $0x8] sm:$0xff]  ;;  %v83_v15 = vld [vmem:[#allocation7 + $0x68] sm:$0xff]  ;;  %v60_v16 = vld [vmem:[#allocation5] sm:$0xff] }
  0x2c   :  { %153 = vmatpush1.msra.mxu0 %v64_v6  ;;  %307 = vmatprep.subr.mxu1 %v100_v10  ;;  %v98_v17 = vld [vmem:[#allocation7 + $0xe0] sm:$0xff]  ;;  %v102_v18 = vld [vmem:[#allocation2] sm:$0xff]  ;;  %v97_v20 = vld [vmem:[#allocation7 + $0xd8] sm:$0xff] }
  0x2d   :  { %154 = vmatprep.subr.mxu0 %v63_v7  ;;  %308 = vmatpush3.msra.mxu1 %v84_v11  ;;  %v82_v19 = vld [vmem:[#allocation7 + $0x60] sm:$0xff]  ;;  %v81_v21 = vld [vmem:[#allocation7 + $0x58] sm:$0xff]  ;;  %v96_v22 = vld [vmem:[#allocation7 + $0xd0] sm:$0xff] }
  0x2e   :  { %155 = vmatpush1.msra.mxu0 %v62_v12  ;;  %309 = vmatprep.subr.mxu1 %v99_v13  ;;  %v80_v23 = vld [vmem:[#allocation7 + $0x50] sm:$0xff]  ;;  %v95_v24 = vld [vmem:[#allocation7 + $0xc8] sm:$0xff]  ;;  %v94_v26 = vld [vmem:[#allocation7 + $0xc0] sm:$0xff] }
  0x2f   :  { %156 = vmatprep.subr.mxu0 %v61_v14  ;;  %310 = vmatpush3.msra.mxu1 %v83_v15  ;;  %v79_v25 = vld [vmem:[#allocation7 + $0x48] sm:$0xff]  ;;  %v78_v27 = vld [vmem:[#allocation7 + $0x40] sm:$0xff]  ;;  %v93_v28 = vld [vmem:[#allocation7 + $0xb8] sm:$0xff] }
  0x30   :  { %157 = vmatpush1.msra.mxu0 %v60_v16  ;;  %311 = vmatprep.subr.mxu1 %v98_v17  ;;  %v77_v29 = vld [vmem:[#allocation7 + $0x38] sm:$0xff]  ;;  %v92_v30 = vld [vmem:[#allocation7 + $0xb0] sm:$0xff]  ;;  %v91_v32 = vld [vmem:[#allocation7 + $0xa8] sm:$0xff] }
  0x31   :  { %302 = vmatmul.mubr.msk.f32.vlgmr.msra.gmra.mxu0 %vm115_vm1, %v102_v18  ;;  %312 = vmatpush3.msra.mxu1 %v82_v19  ;;  %v76_v31 = vld [vmem:[#allocation7 + $0x30] sm:$0xff]  ;;  %v75_v33 = vld [vmem:[#allocation7 + $0x28] sm:$0xff]  ;;  %v90_v34 = vld [vmem:[#allocation7 + $0xa0] sm:$0xff] }
  0x32   :  { %313 = vmatprep.subr.mxu1 %v97_v20  ;;  %v74_v35 = vld [vmem:[#allocation7 + $0x20] sm:$0xff]  ;;  %v89_v36 = vld [vmem:[#allocation7 + $0x98] sm:$0xff]  ;;  %v88_v38 = vld [vmem:[#allocation7 + $0x90] sm:$0xff] }
  0x33   :  { %314 = vmatpush3.msra.mxu1 %v81_v21  ;;  %v73_v37 = vld [vmem:[#allocation7 + $0x18] sm:$0xff]  ;;  %v72_v39 = vld [vmem:[#allocation7 + $0x10] sm:$0xff]  ;;  %v87_v40 = vld [vmem:[#allocation7 + $0x88] sm:$0xff] }
  0x34   :  { %315 = vmatprep.subr.mxu1 %v96_v22  ;;  %v71_v41 = vld [vmem:[#allocation7 + $0x8] sm:$0xff]  ;;  %v86_v42 = vld [vmem:[#allocation7 + $0x80] sm:$0xff] }
  0x35   :  { %316 = vmatpush3.msra.mxu1 %v80_v23  ;;  %v70_v43 = vld [vmem:[#allocation7] sm:$0xff]  ;;  %v103_v47 = vld [vmem:[%s498_s2] sm:$0x3]  ;;  %s447_s2 = smov [#allocation8]  }
  0x36   :  { %317 = vmatprep.subr.mxu1 %v95_v24  ;;  %v108_v49 = vrot.slane %v103_v47, %v107_v46  ;;  %v112_v50 = vrot.slane %v103_v47, %v111_v48  ;;  %v303_v58 = vld [vmem:[%s500_s4] ss:$0 sm:$0xff]  ;;  %s290_s13 = sshll.u32 %s447_s2, 4  ;;  %s291_s13 = int_to_ptr.vmem [resolvable:$true] %s290_s13 }
  0x37   :  { %318 = vmatpush3.msra.mxu1 %v79_v25  ;;  %s413_s14 = scalar_lea.vmem %s291_s13, 128  ;;  %p418_p2 = scmp.lt.s32.totalorder %s291_s13, %s291_s13 }
  0x38   :  { %319 = vmatprep.subr.mxu1 %v94_v26  ;;  %p414_p1 = scmp.ne.s32.totalorder %s291_s13, %s413_s14  ;;  %p419_p3 = scmp.lt.s32.totalorder %s413_s14, %s413_s14 }
  0x39   :  { %320 = vmatpush3.msra.mxu1 %v78_v27 }
  0x3a   :  { %321 = vmatprep.subr.mxu1 %v93_v28  ;;  %p420_p4 = por %p419_p3, %p418_p2 }
  0x3b   :  { %322 = vmatpush3.msra.mxu1 %v77_v29 }
  0x3c   :  { %323 = vmatprep.subr.mxu1 %v92_v30  ;;  %p421_p5 = pnand %p420_p4, %p414_p1 }
  0x3d   :  { %324 = vmatpush3.msra.mxu1 %v76_v31 }
  0x3e   :  { %325 = vmatprep.subr.mxu1 %v91_v32 }
  0x3f   :  { %326 = vmatpush3.msra.mxu1 %v75_v33 }
  0x40   :  { %327 = vmatprep.subr.mxu1 %v90_v34 }
  0x41   :  { %328 = vmatpush3.msra.mxu1 %v74_v35 }
  0x42   :  { %329 = vmatprep.subr.mxu1 %v89_v36 }
  0x43   :  { %330 = vmatpush3.msra.mxu1 %v73_v37 }
  0x44   :  { %331 = vmatprep.subr.mxu1 %v88_v38 }
  0x45   :  { %332 = vmatpush3.msra.mxu1 %v72_v39 }
  0x46   :  { %333 = vmatprep.subr.mxu1 %v87_v40 }
  0x47   :  { %334 = vmatpush3.msra.mxu1 %v71_v41 }
  0x48   :  { %335 = vmatprep.subr.mxu1 %v86_v42 }
  0x49   :  { %336 = vmatpush3.msra.mxu1 %v70_v43 }
  0xf1   :  { %v192_v51 = vpop.f32.mrf.mxu0 }
  0xf2   :  { %v193_v52 = vadd.f32 %v192_v51, %v108_v49 }
  0xf3   :  { %v194_v53 = vpop.f32.mrf.mxu0 }
  0xf4   :  { %v195_v54 = vadd.f32 %v194_v53, %v112_v50  ;;  %v197_v56 = vmax.f32 %v193_v52, 0.0 }
  0xf6   :  { %v198_v55 = vmax.f32 %v195_v54, 0.0 }
  0xf8   :  { %270 = vmatprep.mubr.f32.mxu1 %v198_v55 }
  0xf9   :  { %271 = vmatmul.mubr.f32.vlgmr.msra.gmra.mxu1 %v197_v56 }
 0x1b9   :  { %v337_v57 = vpop.f32.mrf.mxu1 }
 0x1bb   :  { %v338_v59 = vpop.f32.mrf.mxu1 }
 0x1bc   :  { %v339_v60 = vadd.f32 %v338_v59, %v337_v57 }
 0x1be   :  { %v273_v61 = vadd.f32 %v339_v60, %v303_v58 }
 0x1c0   :  { %v304_v62 = vmul.f32 -1.442695, %v273_v61 }
 0x1c2   :  { %349 = vpow2.f32 %v304_v62 }
 0x1cf   :  { %v350_v63 = vpop.eup %349 }
 0x1d0   :  { %v279_v0 = vadd.f32 1.0, %v350_v63 }
 0x1d2   :  { %351 = vrcp.f32 %v279_v0 }
 0x1df   :  { %v352_v1 = vpop.eup %351 }
 0x1e0   :  { %283 = vst.msk [vmem:[#allocation8] sm:$0xff] %vm282_vm2, %v352_v1 }
 0x1e1   :  { %424 = shalt.err (!%p421_p5)
}
 0x1e2   :  { %293 = dma.vmem_to_hbm [thread:$0]  %s291_s13, 128, %s501_s5, [#allocation4]  }
 0x1e3   :  { %437 = dma.done.wait [#allocation4], 128  }
 0x1e4   :  { %438 = vsyncadd [#allocation4], 4294967168 }
 0x1e5   :  { %297 = vsyncpa [#allocation3], 1 }
 0x1e6   :  { %298 = vsyncpa [#allocation6], 1 }
 0x1e7   :  { %299 = vsyncpa [#allocation4], 1 }

</bundles_post_ra>
